<compile_context>
chip_gen: v6e
topology: v6e:2x2x1
jax: 0.10.0
libtpu: 0.0.40
codegen_flags: <defaults>
</compile_context>

<pallas_src>
import jax
import jax.numpy as jnp
from jax.experimental import pallas as pl
from jax.experimental.pallas import tpu as pltpu


def _normalize_kernel(x_ref, o_ref):
    # x_ref: (N, TS, 128). The full batch N is resident, so the axis-0
    # reduction (mean / unbiased variance) is done entirely in-kernel as
    # vreg-vreg adds.
    x = x_ref[...].astype(jnp.float32)
    n = x.shape[0]
    mean = jnp.mean(x, axis=0, keepdims=True)
    diff = x - mean
    # torch.std default is unbiased (ddof = 1); N == 1 gives inf/NaN, same as
    # torch.  1/(n-1) is a static constant -> multiply, not divide.
    var = jnp.sum(diff * diff, axis=0, keepdims=True) * jnp.float32(1.0 / (n - 1))
    std = jnp.sqrt(var)
    denom = std + jnp.float32(1e-6)
    # EUP approximate reciprocal (separate issue slot) + one Newton step on
    # the VPU: rel. error ~(approx_err)^2, essentially exact, still per-column
    # only (TS*128 values) instead of N*TS*128 divides.
    inv = pl.reciprocal(denom, approx=True)
    inv = inv * (jnp.float32(2.0) - denom * inv)
    o_ref[...] = (diff * inv).astype(o_ref.dtype)


def normalize(x):
    """x: (N, C, H, W) -> (N, C, H, W), per-(c,h,w) batch normalization."""
    N, C, H, W = x.shape
    F = C * H * W

    # ---- Tile selection (feature axis in units of 128-lane blocks) --------
    NB = -(-F // 128)  # ceil(F / 128)

    # Per-block f32 working-set budget (~4 MiB). With 2 input + 2 output
    # double-buffers plus in-kernel f32 temps this stays well under the
    # 48 MiB scoped-VMEM limit below (which itself fits v7x's 64 MiB VMEM).
    block_bytes_budget = 4 * 1024 * 1024
    ts_budget = max(1, block_bytes_budget // (N * 128 * 4))

    if NB >= 8:
        ts_cap = max(8, (ts_budget // 8) * 8)
        # Number of grid steps: enough to respect the VMEM budget, and >= 2
        # when there is enough work (v7x has 2 TensorCores per chip).
        G = -(-NB // ts_cap)
        if G < 2 and NB >= 16:
            G = 2
        per = -(-NB // G)
        TS = -(-per // 8) * 8          # round up to a multiple of 8 sublanes
    else:
        G = 1
        TS = NB                        # full (padded) dim -> satisfies (8,128)

    NB_padded = G * TS
    Fp = NB_padded * 128
    grid = (G,)

    # ---- Wrapper reshape / zero-pad ---------------------------------------
    x2 = x.reshape(N, F)
    if Fp != F:
        # Padded columns give mean = 0, std = 0 -> output 0; sliced off below.
        x2 = jnp.pad(x2, ((0, 0), (0, Fp - F)))
    x3 = x2.reshape(N, NB_padded, 128)

    itemsize = jnp.dtype(x.dtype).itemsize
    out3 = pl.pallas_call(
        _normalize_kernel,
        out_shape=jax.ShapeDtypeStruct((N, NB_padded, 128), x.dtype),
        grid_spec=pltpu.PrefetchScalarGridSpec(
            num_scalar_prefetch=0,
            grid=grid,
            in_specs=[pl.BlockSpec((N, TS, 128), lambda i: (0, i, 0))],
            out_specs=pl.BlockSpec((N, TS, 128), lambda i: (0, i, 0)),
        ),
        compiler_params=pltpu.CompilerParams(
            dimension_semantics=("parallel",),
            vmem_limit_bytes=48 * 1024 * 1024,
        ),
        cost_estimate=pl.CostEstimate(
            flops=6 * N * Fp,
            transcendentals=2 * Fp,
            bytes_accessed=2 * N * Fp * itemsize,
        ),
    )(x3)

    out2 = out3.reshape(N, Fp)
    if Fp != F:
        out2 = out2[:, :F]
    return out2.reshape(N, C, H, W)


if __name__ == "__main__":
    key = jax.random.PRNGKey(0)
    x = jax.random.normal(key, (2, 4, 16, 16), dtype=jnp.float32)

    out = jax.block_until_ready(normalize(x))

    # Pure-JAX reference (same semantics as the PyTorch module).
    mean = jnp.mean(x, axis=0, keepdims=True)
    std = jnp.std(x, axis=0, keepdims=True, ddof=1)
    ref = (x - mean) / (std + 1e-6)

    assert out.shape == x.shape and out.dtype == x.dtype
    # Newton-refined EUP reciprocal -> near-exact; modest tolerance for safety.
    assert jnp.allclose(out, ref, atol=1e-3, rtol=1e-3), float(
        jnp.max(jnp.abs(out - ref))
    )
    print("KERNEL_OK")
</pallas_src>

<mosaic_0001>
module attributes {stable_mosaic.version = 11 : i64} {
  func.func @_normalize_kernel(%arg0: i32, %arg1: memref<2x8x128xf32, #tpu.memory_space<vmem>>, %arg2: memref<2x8x128xf32, #tpu.memory_space<vmem>>) attributes {dimension_semantics = [#tpu.dimension_semantics<parallel>], iteration_bounds = array<i64: 1>, scalar_prefetch = 0 : i64, scratch_operands = 0 : i64, tpu.core_type = #tpu.core_type<tc>, window_params = [{transform_indices = @transform_0, window_bounds = array<i64: 2, 8, 128>}, {transform_indices = @transform_1, window_bounds = array<i64: 2, 8, 128>}]} {
    %c0 = arith.constant 0 : index
    %c0_0 = arith.constant 0 : index
    %c0_1 = arith.constant 0 : index
    %0 = vector.load %arg1[%c0, %c0_0, %c0_1] : memref<2x8x128xf32, #tpu.memory_space<vmem>>, vector<2x8x128xf32>
    %cst = arith.constant dense<0.000000e+00> : vector<8x128xf32>
    %1 = vector.multi_reduction <add>, %0, %cst [0] : vector<2x8x128xf32> to vector<8x128xf32>
    %2 = vector.shape_cast %1 : vector<8x128xf32> to vector<1x8x128xf32>
    %cst_2 = arith.constant 2.000000e+00 : f32
    %3 = vector.broadcast %cst_2 : f32 to vector<1x8x128xf32>
    %4 = arith.divf %2, %3 : vector<1x8x128xf32>
    %5 = vector.broadcast %4 : vector<1x8x128xf32> to vector<2x8x128xf32>
    %6 = arith.subf %0, %5 : vector<2x8x128xf32>
    %7 = arith.mulf %6, %6 : vector<2x8x128xf32>
    %cst_3 = arith.constant dense<0.000000e+00> : vector<8x128xf32>
    %8 = vector.multi_reduction <add>, %7, %cst_3 [0] : vector<2x8x128xf32> to vector<8x128xf32>
    %9 = vector.shape_cast %8 : vector<8x128xf32> to vector<1x8x128xf32>
    %cst_4 = arith.constant 1.000000e+00 : f32
    %10 = vector.broadcast %cst_4 : f32 to vector<1x8x128xf32>
    %11 = arith.mulf %9, %10 : vector<1x8x128xf32>
    %12 = math.sqrt %11 : vector<1x8x128xf32>
    %cst_5 = arith.constant 9.99999997E-7 : f32
    %13 = vector.broadcast %cst_5 : f32 to vector<1x8x128xf32>
    %14 = arith.addf %12, %13 : vector<1x8x128xf32>
    %15 = tpu.reciprocal %14 {approx = true} : vector<1x8x128xf32> -> vector<1x8x128xf32>
    %16 = arith.mulf %14, %15 : vector<1x8x128xf32>
    %cst_6 = arith.constant 2.000000e+00 : f32
    %17 = vector.broadcast %cst_6 : f32 to vector<1x8x128xf32>
    %18 = arith.subf %17, %16 : vector<1x8x128xf32>
    %19 = arith.mulf %15, %18 : vector<1x8x128xf32>
    %20 = vector.broadcast %19 : vector<1x8x128xf32> to vector<2x8x128xf32>
    %21 = arith.mulf %6, %20 : vector<2x8x128xf32>
    %c0_7 = arith.constant 0 : index
    %c0_8 = arith.constant 0 : index
    %c0_9 = arith.constant 0 : index
    %22 = vector.load %arg2[%c0_7, %c0_8, %c0_9] : memref<2x8x128xf32, #tpu.memory_space<vmem>>, vector<2x8x128xf32>
    tpu.vector_store %arg2[%c0_7, %c0_8, %c0_9], %21 {strides = array<i32>} : memref<2x8x128xf32, #tpu.memory_space<vmem>>, vector<2x8x128xf32>,
    return
  }
  func.func @transform_0(%arg0: i32) -> (i32, i32, i32) {
    %c0_i32 = arith.constant 0 : i32
    %c0_i32_0 = arith.constant 0 : i32
    %c0_i32_1 = arith.constant 0 : i32
    return %c0_i32, %arg0, %c0_i32_0 : i32, i32, i32
  }
  func.func @transform_1(%arg0: i32) -> (i32, i32, i32) {
    %c0_i32 = arith.constant 0 : i32
    %c0_i32_0 = arith.constant 0 : i32
    %c0_i32_1 = arith.constant 0 : i32
    return %c0_i32, %arg0, %c0_i32_0 : i32, i32, i32
  }
}

</mosaic_0001>

<bundles_post_ra>
// kernel: tpu_custom_call.1
= control target key start
LH: loop header
LB: loop body
LE: loop exit
PB: predicated region body
PF: predicated region fallthrough
CT: control target
= control target key end

     0   :  { %6 = vsyncpa [#allocation3], 0  ;;  %s144_s0 = inlined_call_operand.hbm [shape: f32[2,8,128], index: 0, kind: input, shape index: {}]   ;;  %s145_s1 = inlined_call_operand.hbm [shape: f32[2,8,128], index: 1, kind: output, shape index: {}]  }
   0x1   :  { %7 = vsyncpa [#allocation4], 0  ;;  %s118_s6 = smov [#allocation2]  }
   0x2   :  { %s13_s7 = sshll.u32 %s118_s6, 4  ;;  %s14_s7 = int_to_ptr.vmem [resolvable:$true] %s13_s7 }
   0x3   :  { %s82_s8 = scalar_lea.vmem %s14_s7, 256  ;;  %p87_p1 = scmp.lt.s32.totalorder %s14_s7, %s14_s7 }
   0x4   :  { %p83_p0 = scmp.ne.s32.totalorder %s14_s7, %s82_s8  ;;  %p88_p2 = scmp.lt.s32.totalorder %s82_s8, %s82_s8 }
   0x6   :  { %p89_p3 = por %p88_p2, %p87_p1 }
   0x8   :  { %p90_p4 = pnand %p89_p3, %p83_p0 }
   0xa   :  { %93 = shalt.err (!%p90_p4)
}
   0xb   :  { %s119_s9 = smov 128   ;;  %s120_s10 = smov 8  }
   0xc   :  { %19 = dma.hbm_to_vmem [thread:$0]  %s144_s0, 256, %s14_s7, [#allocation3], %s119_s9, %s119_s9, %s120_s10  }
   0xd   :  { %114 = dma.done.wait [#allocation3], 256  }
   0xe   :  { %115 = vsyncadd [#allocation3], 4294967040  ;;  %v23_v0 = vld [vmem:[#allocation2] sm:$0xff]  ;;  %v24_v1 = vld [vmem:[#allocation2 + $0x8] sm:$0xff]  ;;  %s121_s0 = smov [#allocation5]  }
   0xf   :  { %v25_v2 = vadd.f32 %v24_v1, %v23_v0  ;;  %s54_s13 = sshll.u32 %s121_s0, 4  ;;  %s55_s13 = int_to_ptr.vmem [resolvable:$true] %s54_s13 }
  0x10   :  { %s94_s14 = scalar_lea.vmem %s55_s13, 256  ;;  %p99_p6 = scmp.lt.s32.totalorder %s55_s13, %s55_s13 }
  0x11   :  { %v27_v3 = vmul.f32 0.5, %v25_v2  ;;  %p95_p5 = scmp.ne.s32.totalorder %s55_s13, %s94_s14  ;;  %p100_p7 = scmp.lt.s32.totalorder %s94_s14, %s94_s14 }
  0x13   :  { %v28_v4 = vsub.f32 %v23_v0, %v27_v3  ;;  %v29_v5 = vsub.f32 %v24_v1, %v27_v3  ;;  %p101_p8 = por %p100_p7, %p99_p6 }
  0x15   :  { %v30_v6 = vmul.f32 %v28_v4, %v28_v4  ;;  %v31_v7 = vmul.f32 %v29_v5, %v29_v5  ;;  %p102_p9 = pnand %p101_p8, %p95_p5 }
  0x17   :  { %v32_v8 = vadd.f32 %v31_v7, %v30_v6 }
  0x19   :  { %70 = vrsqrt.f32 %v32_v8  ;;  %vm35_vm0 = vcmp.eq.f32.partialorder %v32_v8, inf  ;;  %v38_v10 = vand.u32 2147483648, %v32_v8  ;;  %vm37_vm1 = vcmp.eq.f32.partialorder %v32_v8, 0.0 }
  0x26   :  { %v71_v9 = vpop.eup %70 }
  0x27   :  { %v34_v11 = vmul.f32 %v71_v9, %v32_v8 }
  0x29   :  { %v36_v12 = vsel %vm35_vm0, %v32_v8, %v34_v11 }
  0x2a   :  { %v39_v13 = vsel %vm37_vm1, %v38_v10, %v36_v12 }
  0x2b   :  { %v40_v14 = vadd.f32 1e-06, %v39_v13 }
  0x2d   :  { %72 = vrcp.f32 %v40_v14 }
  0x3a   :  { %v73_v15 = vpop.eup %72 }
  0x3b   :  { %v42_v16 = vmul.f32 %v73_v15, %v40_v14 }
  0x3d   :  { %v43_v17 = vsub.f32 2.0, %v42_v16 }
  0x3f   :  { %v44_v18 = vmul.f32 %v73_v15, %v43_v17 }
  0x41   :  { %v45_v19 = vmul.f32 %v44_v18, %v28_v4  ;;  %v46_v20 = vmul.f32 %v44_v18, %v29_v5 }
  0x43   :  { %47 = vst [vmem:[#allocation5] sm:$0xff] %v45_v19  ;;  %48 = vst [vmem:[#allocation5 + $0x8] sm:$0xff] %v46_v20 }
  0x44   :  { %105 = shalt.err (!%p102_p9)
}
  0x45   :  { %60 = dma.vmem_to_hbm [thread:$0]  %s55_s13, 256, %s145_s1, [#allocation4], %s119_s9, %s119_s9, %s120_s10  }
  0x46   :  { %116 = dma.done.wait [#allocation4], 256  }
  0x47   :  { %117 = vsyncadd [#allocation4], 4294967040 }
  0x48   :  { %64 = vsyncpa [#allocation3], 1 }
  0x49   :  { %65 = vsyncpa [#allocation4], 1 }

</bundles_post_ra>
